<compile_context>
chip_gen: v6e
topology: v6e:2x2x1
jax: 0.10.0
libtpu: 0.0.40
codegen_flags: <defaults>
</compile_context>

<pallas_src>
import functools

import numpy as np

import jax
import jax.numpy as jnp
from jax.experimental import pallas as pl
from jax.experimental.pallas import tpu as pltpu


def _capsule_kernel(x_ref, w_ref, s_ref, st_ref, o_ref, uhat_ref, *,
                    num_routing):
    """One grid step == `b_tile` batch elements of dynamic routing.

    x_ref   : (b_tile * N_pad, Din)    flattened (batch, primary-capsule) rows
    w_ref   : (Din, CD_pad)            fused per-capsule weights, lane-padded
    s_ref   : (CD_pad, C)              S[c*Dout + d, c] = 1  (per-capsule lane sum)
    st_ref  : (C, CD_pad)              S^T                   (per-capsule broadcast)
    o_ref   : (b_tile, CD_pad)         lane-dense output tile (unmasked vst)
    uhat_ref: (b_tile * N_pad, CD_pad) VMEM scratch holding u_hat
    """
    x = x_ref[...]                               # (M, Din)   f32 (or bf16)
    w = w_ref[...]                               # (Din, CDp)
    S = s_ref[...]                               # (CDp, C)
    St = st_ref[...]                             # (C, CDp)

    M = x.shape[0]
    bt, CDp = o_ref.shape
    Np = M // bt
    C = S.shape[1]

    # --- u_hat: ONE fused MXU matmul for all capsules of all rows, parked in
    #     a VMEM scratch so it is computed once and re-read per iteration. ---
    uhat_ref[...] = jnp.dot(x, w, preferred_element_type=jnp.float32)

    # routing logits, packed along lanes (C lanes; accepted lane sparsity)
    b_ij = jnp.zeros((M, C), jnp.float32)
    v = jnp.zeros((bt, CDp), jnp.float32)

    for it in range(num_routing):
        # softmax over the capsule axis (exact; matches F.softmax semantics)
        b_max = jnp.max(b_ij, axis=-1, keepdims=True)            # (M, 1)
        e = jnp.exp(b_ij - b_max)                                 # EUP
        c_ij = e / jnp.sum(e, axis=-1, keepdims=True)             # (M, C)

        # broadcast coupling coeffs over each capsule's Dout lanes (tiny MXU op)
        c_exp = jnp.dot(c_ij, St, preferred_element_type=jnp.float32)  # (M, CDp)

        u_hat = uhat_ref[...]                                     # (M, CDp)
        weighted = c_exp * u_hat                                  # (M, CDp)

        # s_j: segmented sum over primary capsules.  N_pad is a multiple of 8,
        # so this reshape is layout-preserving and the sum is a cheap sublane
        # reduce (no quadratic 0/1-matrix matmul).
        s = jnp.sum(weighted.reshape(bt, Np, CDp), axis=1)        # (bt, CDp)

        # squash (per batch element, per capsule); rsqrt rides the EUP.
        sq = jnp.dot(s * s, S, preferred_element_type=jnp.float32)     # (bt, C)
        scale = sq / (1.0 + sq) * jax.lax.rsqrt(sq + 1e-8)              # (bt, C)
        v = jnp.dot(scale, St, preferred_element_type=jnp.float32) * s  # (bt, CDp)

        if it < num_routing - 1:
            # agreement: b_ij[m, c] += <u_hat[m, c, :], v[batch(m), c, :]>
            # broadcast v back to rows via a sublane broadcast (not dot(R^T, v))
            v_rows = jnp.broadcast_to(
                v[:, None, :], (bt, Np, CDp)).reshape(M, CDp)     # (M, CDp)
            b_ij = b_ij + jnp.dot(u_hat * v_rows, S,
                                  preferred_element_type=jnp.float32)  # (M, C)

    # single unmasked, lane-dense store (one full tile per grid step)
    o_ref[...] = v.astype(o_ref.dtype)


def capsule_layer(x, W, num_routing=3, b_tile=None, mxu_dtype=None):
    """x: (B, N, in_dim) f32; W: (1, C, in_dim, out_dim) f32 -> (B, C, out_dim).

    mxu_dtype: optional dtype (e.g. jnp.bfloat16) for the u_hat matmul operands
    on bf16-native MXUs (v5e/v6e/v7x); routing math stays f32.  Default keeps
    f32 operands for exact parity with the f32 reference.
    """
    B, N, d_in = x.shape
    _, C, _, d_out = W.shape
    CD = C * d_out
    CD_pad = max(128, pl.cdiv(CD, 128) * 128)     # lane-dense width

    # Pad the primary-capsule axis to a multiple of 8 so the (batch, caps) <->
    # rows reshapes inside the kernel are exact sublane groups.  Zero rows
    # contribute u_hat == 0 and therefore nothing to s_j: exactly equivalent.
    N_pad = max(8, pl.cdiv(N, 8) * 8)
    if N_pad != N:
        x = jnp.pad(x, ((0, 0), (0, N_pad - N), (0, 0)))

    # Batch tile: target ~1024 matmul rows per grid step (amortizes per-step
    # overhead, fills the MXU).  If the batch is big enough, cap the tile so
    # the "parallel" grid axis has >= 2 steps (v7x megacore sharding).
    if b_tile is None:
        b_tile = max(1, 1024 // N_pad)
        half_b = (B // 2 // 8) * 8
        if half_b >= 8 and half_b * N_pad >= 256:
            b_tile = min(b_tile, half_b)
    b_tile = min(b_tile, B)
    if b_tile < B and b_tile % 8 != 0:
        b_tile = max(8, (b_tile // 8) * 8)
    n_steps = pl.cdiv(B, b_tile)
    B_pad = n_steps * b_tile
    if B_pad != B:
        # zero-padded batch rows produce v == 0 and are sliced off below
        x = jnp.pad(x, ((0, B_pad - B), (0, 0), (0, 0)))

    M = b_tile * N_pad
    x2 = x.reshape(B_pad * N_pad, d_in)

    # Fuse per-capsule weights: (C, Din, Dout) -> (Din, C*Dout), then zero-pad
    # the lane axis to CD_pad so every downstream tensor / the output store is
    # a full 128-lane width (unmasked vst; padded lanes stay exactly 0).
    w2 = jnp.transpose(W[0], (1, 0, 2)).reshape(d_in, CD)
    w2 = jnp.pad(w2, ((0, 0), (0, CD_pad - CD)))

    if mxu_dtype is not None:
        x2 = x2.astype(mxu_dtype)
        w2 = w2.astype(mxu_dtype)

    # Tiny constant 0/1 capsule-segment matrices (O(CD*C), VMEM-resident; the
    # quadratic O(b_tile^2 * N) R / R^T matrices of the previous version are gone).
    col_c = np.arange(CD_pad) // d_out
    S = (col_c[:, None] == np.arange(C)[None, :]).astype(np.float32)   # (CDp, C)
    St = np.ascontiguousarray(S.T)                                     # (C, CDp)
    S, St = jnp.asarray(S), jnp.asarray(St)

    kernel = functools.partial(_capsule_kernel, num_routing=num_routing)
    const2d = lambda shape: pl.BlockSpec(shape, lambda i: (0, 0))

    out = pl.pallas_call(
        kernel,
        out_shape=jax.ShapeDtypeStruct((B_pad, CD_pad), jnp.float32),
        grid=(n_steps,),
        in_specs=[
            pl.BlockSpec((M, d_in), lambda i: (i, 0)),   # x rows for this step
            const2d((d_in, CD_pad)),                     # fused, padded W
            const2d((CD_pad, C)),                        # S
            const2d((C, CD_pad)),                        # S^T
        ],
        out_specs=pl.BlockSpec((b_tile, CD_pad), lambda i: (i, 0)),
        scratch_shapes=[pltpu.VMEM((M, CD_pad), jnp.float32)],   # u_hat
        compiler_params=pltpu.CompilerParams(
            dimension_semantics=("parallel",)),
    )(x2, w2, S, St)

    return out[:B, :CD].reshape(B, C, d_out)


def capsule_layer_ref(x, W, num_routing=3):
    """Pure-JAX reference mirroring the PyTorch forward exactly."""
    u_hat = jnp.einsum('bni,cio->bnco', x, W[0])          # (B, N, C, Dout)
    B, N, C, _ = u_hat.shape
    b_ij = jnp.zeros((B, N, C), jnp.float32)
    v_j = None
    for it in range(num_routing):
        c_ij = jax.nn.softmax(b_ij, axis=2)
        s_j = jnp.sum(c_ij[..., None] * u_hat, axis=1)    # (B, C, Dout)
        sq = jnp.sum(s_j * s_j, axis=-1, keepdims=True)
        v_j = sq / (1.0 + sq) / jnp.sqrt(sq + 1e-8) * s_j
        if it < num_routing - 1:
            b_ij = b_ij + jnp.sum(u_hat * v_j[:, None], axis=-1)
    return v_j


if __name__ == "__main__":
    # Small shapes consistent with the module's forward:
    #   batch=2, num_primary_caps=8, in_dim=16, num_capsules=4, out_dim=16
    B, N, D_IN, C, D_OUT = 2, 8, 16, 4, 16
    NUM_ROUTING = 3

    key = jax.random.PRNGKey(0)
    kx, kw = jax.random.split(key)
    x = jax.random.normal(kx, (B, N, D_IN), dtype=jnp.float32)
    W = jax.random.normal(kw, (1, C, D_IN, D_OUT), dtype=jnp.float32)

    out = capsule_layer(x, W, num_routing=NUM_ROUTING)
    out = jax.block_until_ready(out)

    ref = capsule_layer_ref(x, W, num_routing=NUM_ROUTING)
    assert out.shape == (B, C, D_OUT)
    assert jnp.allclose(out, ref, rtol=1e-3, atol=1e-4), (
        f"max abs err {jnp.max(jnp.abs(out - ref))}")

    print("KERNEL_OK")
</pallas_src>

<mosaic_0001>
module attributes {stable_mosaic.version = 11 : i64} {
  func.func @_capsule_kernel(%arg0: i32, %arg1: memref<16x16xf32, #tpu.memory_space<vmem>>, %arg2: memref<16x128xf32, #tpu.memory_space<vmem>>, %arg3: memref<128x4xf32, #tpu.memory_space<vmem>>, %arg4: memref<4x128xf32, #tpu.memory_space<vmem>>, %arg5: memref<2x128xf32, #tpu.memory_space<vmem>>, %arg6: memref<16x128xf32, #tpu.memory_space<vmem>>) attributes {dimension_semantics = [#tpu.dimension_semantics<parallel>], iteration_bounds = array<i64: 1>, scalar_prefetch = 0 : i64, scratch_operands = 1 : i64, tpu.core_type = #tpu.core_type<tc>, window_params = [{transform_indices = @transform_0, window_bounds = array<i64: 16, 16>}, {pipeline_mode = #tpu.pipeline_mode<synchronous>, transform_indices = @transform_1, window_bounds = array<i64: 16, 128>}, {pipeline_mode = #tpu.pipeline_mode<synchronous>, transform_indices = @transform_2, window_bounds = array<i64: 128, 4>}, {pipeline_mode = #tpu.pipeline_mode<synchronous>, transform_indices = @transform_3, window_bounds = array<i64: 4, 128>}, {transform_indices = @transform_4, window_bounds = array<i64: 2, 128>}]} {
    %c0 = arith.constant 0 : index
    %c0_0 = arith.constant 0 : index
    %0 = vector.load %arg1[%c0, %c0_0] : memref<16x16xf32, #tpu.memory_space<vmem>>, vector<16x16xf32>
    %c0_1 = arith.constant 0 : index
    %c0_2 = arith.constant 0 : index
    %1 = vector.load %arg2[%c0_1, %c0_2] : memref<16x128xf32, #tpu.memory_space<vmem>>, vector<16x128xf32>
    %c0_3 = arith.constant 0 : index
    %c0_4 = arith.constant 0 : index
    %2 = vector.load %arg3[%c0_3, %c0_4] : memref<128x4xf32, #tpu.memory_space<vmem>>, vector<128x4xf32>
    %c0_5 = arith.constant 0 : index
    %c0_6 = arith.constant 0 : index
    %3 = vector.load %arg4[%c0_5, %c0_6] : memref<4x128xf32, #tpu.memory_space<vmem>>, vector<4x128xf32>
    %cst = arith.constant dense<0.000000e+00> : vector<16x128xf32>
    %4 = tpu.matmul %0, %1, %cst {dimension_numbers = #tpu.dot_dimension_numbers<[1], [0], [0], [1], [0, 0, 1, 1], [], []>} : vector<16x16xf32>, vector<16x128xf32>, vector<16x128xf32> -> vector<16x128xf32>
    %c0_7 = arith.constant 0 : index
    %c0_8 = arith.constant 0 : index
    %5 = vector.load %arg6[%c0_7, %c0_8] : memref<16x128xf32, #tpu.memory_space<vmem>>, vector<16x128xf32>
    tpu.vector_store %arg6[%c0_7, %c0_8], %4 {strides = array<i32>} : memref<16x128xf32, #tpu.memory_space<vmem>>, vector<16x128xf32>,
    %cst_9 = arith.constant 0.000000e+00 : f32
    %6 = vector.broadcast %cst_9 : f32 to vector<16x4xf32>
    %cst_10 = arith.constant dense<0xFF800000> : vector<16xf32>
    %7 = vector.multi_reduction <maximumf>, %6, %cst_10 [1] : vector<16x4xf32> to vector<16xf32>
    %8 = vector.shape_cast %7 : vector<16xf32> to vector<16x1xf32>
    %9 = vector.broadcast %8 : vector<16x1xf32> to vector<16x4xf32>
    %10 = arith.subf %6, %9 : vector<16x4xf32>
    %11 = math.exp %10 : vector<16x4xf32>
    %cst_11 = arith.constant dense<0.000000e+00> : vector<16xf32>
    %12 = vector.multi_reduction <add>, %11, %cst_11 [1] : vector<16x4xf32> to vector<16xf32>
    %13 = vector.shape_cast %12 : vector<16xf32> to vector<16x1xf32>
    %14 = vector.broadcast %13 : vector<16x1xf32> to vector<16x4xf32>
    %15 = arith.divf %11, %14 : vector<16x4xf32>
    %cst_12 = arith.constant dense<0.000000e+00> : vector<16x128xf32>
    %16 = tpu.matmul %15, %3, %cst_12 {dimension_numbers = #tpu.dot_dimension_numbers<[1], [0], [0], [1], [0, 0, 1, 1], [], []>} : vector<16x4xf32>, vector<4x128xf32>, vector<16x128xf32> -> vector<16x128xf32>
    %c0_13 = arith.constant 0 : index
    %c0_14 = arith.constant 0 : index
    %17 = vector.load %arg6[%c0_13, %c0_14] : memref<16x128xf32, #tpu.memory_space<vmem>>, vector<16x128xf32>
    %18 = arith.mulf %16, %17 : vector<16x128xf32>
    %19 = vector.shape_cast %18 : vector<16x128xf32> to vector<2x8x128xf32>
    %cst_15 = arith.constant dense<0.000000e+00> : vector<2x128xf32>
    %20 = vector.multi_reduction <add>, %19, %cst_15 [1] : vector<2x8x128xf32> to vector<2x128xf32>
    %21 = arith.mulf %20, %20 : vector<2x128xf32>
    %cst_16 = arith.constant dense<0.000000e+00> : vector<2x4xf32>
    %22 = tpu.matmul %21, %2, %cst_16 {dimension_numbers = #tpu.dot_dimension_numbers<[1], [0], [0], [1], [0, 0, 1, 1], [], []>} : vector<2x128xf32>, vector<128x4xf32>, vector<2x4xf32> -> vector<2x4xf32>
    %cst_17 = arith.constant 1.000000e+00 : f32
    %23 = vector.broadcast %cst_17 : f32 to vector<2x4xf32>
    %24 = arith.addf %23, %22 : vector<2x4xf32>
    %25 = arith.divf %22, %24 : vector<2x4xf32>
    %cst_18 = arith.constant 9.99999993E-9 : f32
    %26 = vector.broadcast %cst_18 : f32 to vector<2x4xf32>
    %27 = arith.addf %22, %26 : vector<2x4xf32>
    %28 = math.rsqrt %27 : vector<2x4xf32>
    %29 = arith.mulf %25, %28 : vector<2x4xf32>
    %cst_19 = arith.constant dense<0.000000e+00> : vector<2x128xf32>
    %30 = tpu.matmul %29, %3, %cst_19 {dimension_numbers = #tpu.dot_dimension_numbers<[1], [0], [0], [1], [0, 0, 1, 1], [], []>} : vector<2x4xf32>, vector<4x128xf32>, vector<2x128xf32> -> vector<2x128xf32>
    %31 = arith.mulf %30, %20 : vector<2x128xf32>
    %32 = vector.shape_cast %31 : vector<2x128xf32> to vector<2x1x128xf32>
    %33 = vector.shape_cast %32 : vector<2x1x128xf32> to vector<2x1x128xf32>
    %34 = vector.broadcast %33 : vector<2x1x128xf32> to vector<2x8x128xf32>
    %35 = vector.shape_cast %34 : vector<2x8x128xf32> to vector<16x128xf32>
    %36 = arith.mulf %17, %35 : vector<16x128xf32>
    %cst_20 = arith.constant dense<0.000000e+00> : vector<16x4xf32>
    %37 = tpu.matmul %36, %2, %cst_20 {dimension_numbers = #tpu.dot_dimension_numbers<[1], [0], [0], [1], [0, 0, 1, 1], [], []>} : vector<16x128xf32>, vector<128x4xf32>, vector<16x4xf32> -> vector<16x4xf32>
    %38 = arith.addf %6, %37 : vector<16x4xf32>
    %cst_21 = arith.constant dense<0xFF800000> : vector<16xf32>
    %39 = vector.multi_reduction <maximumf>, %38, %cst_21 [1] : vector<16x4xf32> to vector<16xf32>
    %40 = vector.shape_cast %39 : vector<16xf32> to vector<16x1xf32>
    %41 = vector.broadcast %40 : vector<16x1xf32> to vector<16x4xf32>
    %42 = arith.subf %38, %41 : vector<16x4xf32>
    %43 = math.exp %42 : vector<16x4xf32>
    %cst_22 = arith.constant dense<0.000000e+00> : vector<16xf32>
    %44 = vector.multi_reduction <add>, %43, %cst_22 [1] : vector<16x4xf32> to vector<16xf32>
    %45 = vector.shape_cast %44 : vector<16xf32> to vector<16x1xf32>
    %46 = vector.broadcast %45 : vector<16x1xf32> to vector<16x4xf32>
    %47 = arith.divf %43, %46 : vector<16x4xf32>
    %cst_23 = arith.constant dense<0.000000e+00> : vector<16x128xf32>
    %48 = tpu.matmul %47, %3, %cst_23 {dimension_numbers = #tpu.dot_dimension_numbers<[1], [0], [0], [1], [0, 0, 1, 1], [], []>} : vector<16x4xf32>, vector<4x128xf32>, vector<16x128xf32> -> vector<16x128xf32>
    %c0_24 = arith.constant 0 : index
    %c0_25 = arith.constant 0 : index
    %49 = vector.load %arg6[%c0_24, %c0_25] : memref<16x128xf32, #tpu.memory_space<vmem>>, vector<16x128xf32>
    %50 = arith.mulf %48, %49 : vector<16x128xf32>
    %51 = vector.shape_cast %50 : vector<16x128xf32> to vector<2x8x128xf32>
    %cst_26 = arith.constant dense<0.000000e+00> : vector<2x128xf32>
    %52 = vector.multi_reduction <add>, %51, %cst_26 [1] : vector<2x8x128xf32> to vector<2x128xf32>
    %53 = arith.mulf %52, %52 : vector<2x128xf32>
    %cst_27 = arith.constant dense<0.000000e+00> : vector<2x4xf32>
    %54 = tpu.matmul %53, %2, %cst_27 {dimension_numbers = #tpu.dot_dimension_numbers<[1], [0], [0], [1], [0, 0, 1, 1], [], []>} : vector<2x128xf32>, vector<128x4xf32>, vector<2x4xf32> -> vector<2x4xf32>
    %cst_28 = arith.constant 1.000000e+00 : f32
    %55 = vector.broadcast %cst_28 : f32 to vector<2x4xf32>
    %56 = arith.addf %55, %54 : vector<2x4xf32>
    %57 = arith.divf %54, %56 : vector<2x4xf32>
    %cst_29 = arith.constant 9.99999993E-9 : f32
    %58 = vector.broadcast %cst_29 : f32 to vector<2x4xf32>
    %59 = arith.addf %54, %58 : vector<2x4xf32>
    %60 = math.rsqrt %59 : vector<2x4xf32>
    %61 = arith.mulf %57, %60 : vector<2x4xf32>
    %cst_30 = arith.constant dense<0.000000e+00> : vector<2x128xf32>
    %62 = tpu.matmul %61, %3, %cst_30 {dimension_numbers = #tpu.dot_dimension_numbers<[1], [0], [0], [1], [0, 0, 1, 1], [], []>} : vector<2x4xf32>, vector<4x128xf32>, vector<2x128xf32> -> vector<2x128xf32>
    %63 = arith.mulf %62, %52 : vector<2x128xf32>
    %64 = vector.shape_cast %63 : vector<2x128xf32> to vector<2x1x128xf32>
    %65 = vector.shape_cast %64 : vector<2x1x128xf32> to vector<2x1x128xf32>
    %66 = vector.broadcast %65 : vector<2x1x128xf32> to vector<2x8x128xf32>
    %67 = vector.shape_cast %66 : vector<2x8x128xf32> to vector<16x128xf32>
    %68 = arith.mulf %49, %67 : vector<16x128xf32>
    %cst_31 = arith.constant dense<0.000000e+00> : vector<16x4xf32>
    %69 = tpu.matmul %68, %2, %cst_31 {dimension_numbers = #tpu.dot_dimension_numbers<[1], [0], [0], [1], [0, 0, 1, 1], [], []>} : vector<16x128xf32>, vector<128x4xf32>, vector<16x4xf32> -> vector<16x4xf32>
    %70 = arith.addf %38, %69 : vector<16x4xf32>
    %cst_32 = arith.constant dense<0xFF800000> : vector<16xf32>
    %71 = vector.multi_reduction <maximumf>, %70, %cst_32 [1] : vector<16x4xf32> to vector<16xf32>
    %72 = vector.shape_cast %71 : vector<16xf32> to vector<16x1xf32>
    %73 = vector.broadcast %72 : vector<16x1xf32> to vector<16x4xf32>
    %74 = arith.subf %70, %73 : vector<16x4xf32>
    %75 = math.exp %74 : vector<16x4xf32>
    %cst_33 = arith.constant dense<0.000000e+00> : vector<16xf32>
    %76 = vector.multi_reduction <add>, %75, %cst_33 [1] : vector<16x4xf32> to vector<16xf32>
    %77 = vector.shape_cast %76 : vector<16xf32> to vector<16x1xf32>
    %78 = vector.broadcast %77 : vector<16x1xf32> to vector<16x4xf32>
    %79 = arith.divf %75, %78 : vector<16x4xf32>
    %cst_34 = arith.constant dense<0.000000e+00> : vector<16x128xf32>
    %80 = tpu.matmul %79, %3, %cst_34 {dimension_numbers = #tpu.dot_dimension_numbers<[1], [0], [0], [1], [0, 0, 1, 1], [], []>} : vector<16x4xf32>, vector<4x128xf32>, vector<16x128xf32> -> vector<16x128xf32>
    %c0_35 = arith.constant 0 : index
    %c0_36 = arith.constant 0 : index
    %81 = vector.load %arg6[%c0_35, %c0_36] : memref<16x128xf32, #tpu.memory_space<vmem>>, vector<16x128xf32>
    %82 = arith.mulf %80, %81 : vector<16x128xf32>
    %83 = vector.shape_cast %82 : vector<16x128xf32> to vector<2x8x128xf32>
    %cst_37 = arith.constant dense<0.000000e+00> : vector<2x128xf32>
    %84 = vector.multi_reduction <add>, %83, %cst_37 [1] : vector<2x8x128xf32> to vector<2x128xf32>
    %85 = arith.mulf %84, %84 : vector<2x128xf32>
    %cst_38 = arith.constant dense<0.000000e+00> : vector<2x4xf32>
    %86 = tpu.matmul %85, %2, %cst_38 {dimension_numbers = #tpu.dot_dimension_numbers<[1], [0], [0], [1], [0, 0, 1, 1], [], []>} : vector<2x128xf32>, vector<128x4xf32>, vector<2x4xf32> -> vector<2x4xf32>
    %cst_39 = arith.constant 1.000000e+00 : f32
    %87 = vector.broadcast %cst_39 : f32 to vector<2x4xf32>
    %88 = arith.addf %87, %86 : vector<2x4xf32>
    %89 = arith.divf %86, %88 : vector<2x4xf32>
    %cst_40 = arith.constant 9.99999993E-9 : f32
    %90 = vector.broadcast %cst_40 : f32 to vector<2x4xf32>
    %91 = arith.addf %86, %90 : vector<2x4xf32>
    %92 = math.rsqrt %91 : vector<2x4xf32>
    %93 = arith.mulf %89, %92 : vector<2x4xf32>
    %cst_41 = arith.constant dense<0.000000e+00> : vector<2x128xf32>
    %94 = tpu.matmul %93, %3, %cst_41 {dimension_numbers = #tpu.dot_dimension_numbers<[1], [0], [0], [1], [0, 0, 1, 1], [], []>} : vector<2x4xf32>, vector<4x128xf32>, vector<2x128xf32> -> vector<2x128xf32>
    %95 = arith.mulf %94, %84 : vector<2x128xf32>
    %c0_42 = arith.constant 0 : index
    %c0_43 = arith.constant 0 : index
    %96 = vector.load %arg5[%c0_42, %c0_43] : memref<2x128xf32, #tpu.memory_space<vmem>>, vector<2x128xf32>
    tpu.vector_store %arg5[%c0_42, %c0_43], %95 {strides = array<i32>} : memref<2x128xf32, #tpu.memory_space<vmem>>, vector<2x128xf32>,
    return
  }
  func.func @transform_0(%arg0: i32) -> (i32, i32) {
    %c0_i32 = arith.constant 0 : i32
    %c0_i32_0 = arith.constant 0 : i32
    return %arg0, %c0_i32 : i32, i32
  }
  func.func @transform_1(%arg0: i32) -> (i32, i32) {
    %c0_i32 = arith.constant 0 : i32
    %c0_i32_0 = arith.constant 0 : i32
    %c0_i32_1 = arith.constant 0 : i32
    return %c0_i32, %c0_i32_0 : i32, i32
  }
  func.func @transform_2(%arg0: i32) -> (i32, i32) {
    %c0_i32 = arith.constant 0 : i32
    %c0_i32_0 = arith.constant 0 : i32
    %c0_i32_1 = arith.constant 0 : i32
    return %c0_i32, %c0_i32_0 : i32, i32
  }
  func.func @transform_3(%arg0: i32) -> (i32, i32) {
    %c0_i32 = arith.constant 0 : i32
    %c0_i32_0 = arith.constant 0 : i32
    %c0_i32_1 = arith.constant 0 : i32
    return %c0_i32, %c0_i32_0 : i32, i32
  }
  func.func @transform_4(%arg0: i32) -> (i32, i32) {
    %c0_i32 = arith.constant 0 : i32
    %c0_i32_0 = arith.constant 0 : i32
    return %arg0, %c0_i32 : i32, i32
  }
}

</mosaic_0001>

<bundles_post_ra>
// kernel: tpu_custom_call.1
= control target key start
LH: loop header
LB: loop body
LE: loop exit
PB: predicated region body
PF: predicated region fallthrough
CT: control target
= control target key end

     0   :  { %vm123_vm0 = vcmask 31744   ;;  %s1961_s0 = inlined_call_operand.vmem [shape: f32[16,16], index: 0, kind: input, shape index: {}]   ;;  %s1962_s1 = inlined_call_operand.vmem [shape: f32[16,128], index: 1, kind: input, shape index: {}]   ;;  %s1963_s2 = inlined_call_operand.vmem [shape: f32[128,4], index: 2, kind: input, shape index: {}]   ;;  %s1964_s3 = inlined_call_operand.vmem [shape: f32[4,128], index: 3, kind: input, shape index: {}]   ;;  %s1965_s4 = inlined_call_operand.hbm [shape: f32[2,128], index: 4, kind: output, shape index: {}]  }
   0x1   :  { %9 = vsyncpa [#allocation4], 0  ;;  %v1570_v0 = vmov 0.0   ;;  %v21_v2 = vld [vmem:[%s1962_s1 + $0x8] sm:$0xff]  ;;  %v20_v3 = vld [vmem:[%s1962_s1] sm:$0xff]  ;;  %vm39_vm1 = vcmask 130048   ;;  %v392_v57 = vlaneseq }
   0x2   :  { %v124_v1 = vsel %vm123_vm0, 1.0, %v1570_v0  ;;  %1314 = vmatprep.subr.mxu1 %v1570_v0  ;;  %v18_v4 = vld [vmem:[%s1961_s0] sm:$0xff]  ;;  %1302 = vmatprep.subr.mxu0 %v21_v2  ;;  %v19_v5 = vld [vmem:[%s1961_s0 + $0x8] sm:$0xff]  ;;  %vm132_vm2 = vcmask 1043456   ;;  %v1627_v7 = vld [vmem:[%s1963_s2 + $0x78] sm:$0xff]  ;;  %vm1571_vm3 = vmmov 0  }
   0x3   :  { %125 = vadd.xlane.f32.xlu0 %v124_v1  ;;  %1306 = vmatprep.mubr.msk.f32.mxu0 %vm39_vm1, %v18_v4  ;;  %v1617_v6 = vld [vmem:[%s1964_s3] sm:$0xf]  ;;  %v1632_v8 = vld [vmem:[%s1963_s2 + $0x70] sm:$0xff]  ;;  %v1639_v9 = vld [vmem:[%s1963_s2 + $0x68] sm:$0xff]  ;;  %vm231_vm4 = vcmask 1041409   ;;  %v393_v59 = vshrl.u32 %v392_v57, 7 }
   0x4   :  { %1303 = vmatpush3.msra.mxu0 %v21_v2  ;;  %1315 = vmatpush3.msra.mxu1 %v1627_v7  ;;  %v1648_v10 = vld [vmem:[%s1963_s2 + $0x60] sm:$0xff]  ;;  %v1655_v11 = vld [vmem:[%s1963_s2 + $0x58] sm:$0xff]  ;;  %v1660_v12 = vld [vmem:[%s1963_s2 + $0x50] sm:$0xff]  ;;  %v1572_v55 = vmov 1966171168  }
   0x5   :  { %1304 = vmatprep.subr.mxu0 %v20_v3  ;;  %1316 = vmatprep.subr.mxu1 %v1570_v0  ;;  %v1674_v15 = vld [vmem:[%s1963_s2 + $0x48] sm:$0xff]  ;;  %v1681_v16 = vld [vmem:[%s1963_s2 + $0x40] sm:$0xff]  ;;  %v1688_v17 = vld [vmem:[%s1963_s2 + $0x38] sm:$0xff]  ;;  %v390_v56 = vunpack.c.l.s4 %v1572_v55  ;;  %v1827_v2 = vsub.s32 0, %v393_v59 }
   0x6   :  { %1305 = vmatpush3.msra.mxu0 %v20_v3  ;;  %1317 = vmatpush3.msra.mxu1 %v1632_v8  ;;  %v1695_v18 = vld [vmem:[%s1963_s2 + $0x30] sm:$0xff]  ;;  %v1702_v19 = vld [vmem:[%s1963_s2 + $0x28] sm:$0xff]  ;;  %v1709_v20 = vld [vmem:[%s1963_s2 + $0x20] sm:$0xff] }
   0x7   :  { %1307 = vmatmul.mubr.msk.f32.vlgmr.msra.gmra.mxu0 %vm39_vm1, %v19_v5  ;;  %1309 = vmatprep.subr.msk.mxu0 %vm132_vm2, %v1617_v6  ;;  %v1716_v21 = vld [vmem:[%s1963_s2 + $0x18] sm:$0xff]  ;;  %v1723_v22 = vld [vmem:[%s1963_s2 + $0x10] sm:$0xff]  ;;  %v1729_v23 = vld [vmem:[%s1963_s2 + $0x8] sm:$0xff]  ;;  %v391_v58 = vunpack.c.0.s8 %v390_v56 }
   0x8   :  { %1310 = vmatpush3.msk.msra.mxu0 %vm132_vm2, %v1617_v6  ;;  %1318 = vmatprep.subr.mxu1 %v1570_v0  ;;  %v1735_v24 = vld [vmem:[%s1963_s2] sm:$0xff]  ;;  %s1573_s2 = smov [#allocation3]  }
   0x9   :  { %1349 = vmatprep.subr.mxu0 %v1570_v0  ;;  %1319 = vmatpush3.msra.mxu1 %v1639_v9  ;;  %v1823_v60 = vsub.s32 %v391_v58, %v393_v59  ;;  %s1171_s3 = sshll.u32 %s1573_s2, 4  ;;  %s1172_s3 = int_to_ptr.vmem [resolvable:$true] %s1171_s3 }
   0xa   :  { %1320 = vmatprep.subr.mxu1 %v1570_v0  ;;  %1346 = vmatprep.mubr.msk.f32.mxu1 %vm1571_vm3, %v1570_v0  ;;  %s1548_s26 = scalar_lea.vmem %s1172_s3, 32  ;;  %p1553_p1 = scmp.lt.s32.totalorder %s1172_s3, %s1172_s3 }
   0xb   :  { %1321 = vmatpush3.msra.mxu1 %v1648_v10  ;;  %p1549_p0 = scmp.ne.s32.totalorder %s1172_s3, %s1548_s26  ;;  %p1554_p2 = scmp.lt.s32.totalorder %s1548_s26, %s1548_s26 }
   0xc   :  { %1322 = vmatprep.subr.mxu1 %v1570_v0 }
   0xd   :  { %1323 = vmatpush3.msra.mxu1 %v1655_v11  ;;  %p1555_p3 = por %p1554_p2, %p1553_p1 }
   0xe   :  { %1324 = vmatprep.subr.mxu1 %v1570_v0 }
   0xf   :  { %1325 = vmatpush3.msra.mxu1 %v1660_v12  ;;  %p1556_p4 = pnand %p1555_p3, %p1549_p0 }
  0x10   :  { %1326 = vmatprep.subr.mxu1 %v1570_v0 }
  0x11   :  { %1327 = vmatpush3.msra.mxu1 %v1674_v15 }
  0x12   :  { %1328 = vmatprep.subr.mxu1 %v1570_v0 }
  0x13   :  { %1329 = vmatpush3.msra.mxu1 %v1681_v16 }
  0x14   :  { %1330 = vmatprep.subr.mxu1 %v1570_v0 }
  0x15   :  { %1331 = vmatpush3.msra.mxu1 %v1688_v17 }
  0x16   :  { %1332 = vmatprep.subr.mxu1 %v1570_v0 }
  0x17   :  { %1333 = vmatpush3.msra.mxu1 %v1695_v18 }
  0x18   :  { %1334 = vmatprep.subr.mxu1 %v1570_v0 }
  0x19   :  { %1335 = vmatpush3.msra.mxu1 %v1702_v19 }
  0x1a   :  { %1336 = vmatprep.subr.mxu1 %v1570_v0 }
  0x1b   :  { %1337 = vmatpush3.msra.mxu1 %v1709_v20 }
  0x1c   :  { %1338 = vmatprep.subr.mxu1 %v1570_v0 }
  0x1d   :  { %1339 = vmatpush3.msra.mxu1 %v1716_v21 }
  0x1e   :  { %1340 = vmatprep.subr.mxu1 %v1570_v0 }
  0x1f   :  { %1341 = vmatpush3.msra.mxu1 %v1723_v22 }
  0x20   :  { %1342 = vmatprep.subr.mxu1 %v1570_v0 }
  0x21   :  { %1343 = vmatpush3.msra.mxu1 %v1729_v23 }
  0x22   :  { %1344 = vmatprep.subr.mxu1 %v1570_v0 }
  0x23   :  { %1345 = vmatpush3.msra.mxu1 %v1735_v24 }
  0x24   :  { %1394 = vmatprep.subr.mxu1 %v1570_v0 }
  0x8c   :  { %v126_v13 = vpop.xlane.xlu0 %125 }
  0x8d   :  { %1518 = vrcp.f32 %v126_v13 }
  0x9a   :  { %v1519_v14 = vpop.eup %1518 }
  0x9b   :  { %1311 = vmatprep.mubr.msk.f32.mxu0 %vm123_vm0, %v1519_v14 }
  0x9c   :  { %1312 = vmatmul.mubr.msk.f32.vlgmr.msra.gmra.mxu0 %vm123_vm0, %v1519_v14 }
  0x9d   :  { %1350 = vmatpush3.msk.msra.mxu0 %vm132_vm2, %v1617_v6  ;;  %1351 = vmatprep.mubr.msk.f32.mxu0 %vm1571_vm3, %v1570_v0 }
  0x9e   :  { %1354 = vmatprep.subr.mxu0 %v1627_v7 }
  0xc7   :  { %v1745_v25 = vpop.f32.mrf.mxu0 }
  0xc9   :  { %v1747_v26 = vpop.f32.mrf.mxu0 }
 0x15c   :  { %v1313_v27 = vpop.f32.mrf.mxu0 }
 0x15d   :  { %v214_v28 = vmul.f32 %v1313_v27, %v1745_v25 }
 0x15e   :  { %v202_v29 = vpop.f32.mrf.mxu0 }
 0x15f   :  { %v221_v30 = vrot.slane %v214_v28, 4  ;;  %v213_v31 = vmul.f32 %v202_v29, %v1747_v26 }
 0x161   :  { %v222_v32 = vadd.f32 %v221_v30, %v214_v28  ;;  %v215_v33 = vrot.slane %v213_v31, 4 }
 0x163   :  { %v223_v34 = vrot.slane %v222_v32, 2  ;;  %v216_v35 = vadd.f32 %v215_v33, %v213_v31 }
 0x165   :  { %v224_v36 = vadd.f32 %v223_v34, %v222_v32  ;;  %v217_v37 = vrot.slane %v216_v35, 2 }
 0x167   :  { %v225_v38 = vrot.slane %v224_v36, 1  ;;  %v218_v39 = vadd.f32 %v217_v37, %v216_v35 }
 0x169   :  { %v226_v40 = vadd.f32 %v225_v38, %v224_v36  ;;  %v219_v41 = vrot.slane %v218_v39, 1 }
 0x16b   :  { %v220_v42 = vadd.f32 %v219_v41, %v218_v39  ;;  %v228_v44 = vmul.f32 %v226_v40, %v226_v40 }
 0x16d   :  { %v227_v43 = vmul.f32 %v220_v42, %v220_v42  ;;  %v1752_v45 = vsel %vm231_vm4, %v226_v40, %v220_v42 }
 0x16f   :  { %v232_v46 = vsel %vm231_vm4, %v228_v44, %v227_v43 }
 0x170   :  { %1347 = vmatmul.mubr.f32.vlgmr.msra.gmra.mxu1 %v232_v46 }
 0x171   :  { %1395 = vmatpush3.msra.mxu1 %v1627_v7  ;;  %1426 = vmatprep.mubr.msk.f32.mxu1 %vm1571_vm3, %v1570_v0 }
 0x172   :  { %1396 = vmatprep.subr.mxu1 %v1570_v0 }
 0x173   :  { %1397 = vmatpush3.msra.mxu1 %v1632_v8 }
 0x174   :  { %1398 = vmatprep.subr.mxu1 %v1570_v0 }
 0x175   :  { %1399 = vmatpush3.msra.mxu1 %v1639_v9 }
 0x176   :  { %1400 = vmatprep.subr.mxu1 %v1570_v0 }
 0x177   :  { %1401 = vmatpush3.msra.mxu1 %v1648_v10 }
 0x178   :  { %1402 = vmatprep.subr.mxu1 %v1570_v0 }
 0x179   :  { %1403 = vmatpush3.msra.mxu1 %v1655_v11 }
 0x17a   :  { %1404 = vmatprep.subr.mxu1 %v1570_v0 }
 0x17b   :  { %1405 = vmatpush3.msra.mxu1 %v1660_v12 }
 0x17c   :  { %1406 = vmatprep.subr.mxu1 %v1570_v0 }
 0x17d   :  { %1407 = vmatpush3.msra.mxu1 %v1674_v15 }
 0x17e   :  { %1408 = vmatprep.subr.mxu1 %v1570_v0 }
 0x17f   :  { %1409 = vmatpush3.msra.mxu1 %v1681_v16 }
 0x180   :  { %1410 = vmatprep.subr.mxu1 %v1570_v0 }
 0x181   :  { %1411 = vmatpush3.msra.mxu1 %v1688_v17 }
 0x182   :  { %1412 = vmatprep.subr.mxu1 %v1570_v0 }
 0x183   :  { %1413 = vmatpush3.msra.mxu1 %v1695_v18 }
 0x184   :  { %1414 = vmatprep.subr.mxu1 %v1570_v0 }
 0x185   :  { %1415 = vmatpush3.msra.mxu1 %v1702_v19 }
 0x186   :  { %1416 = vmatprep.subr.mxu1 %v1570_v0 }
 0x187   :  { %1417 = vmatpush3.msra.mxu1 %v1709_v20 }
 0x188   :  { %1418 = vmatprep.subr.mxu1 %v1570_v0 }
 0x189   :  { %1419 = vmatpush3.msra.mxu1 %v1716_v21 }
 0x18a   :  { %1420 = vmatprep.subr.mxu1 %v1570_v0 }
 0x18b   :  { %1421 = vmatpush3.msra.mxu1 %v1723_v22 }
 0x18c   :  { %1422 = vmatprep.subr.mxu1 %v1570_v0 }
 0x18d   :  { %1423 = vmatpush3.msra.mxu1 %v1729_v23 }
 0x18e   :  { %1424 = vmatprep.subr.mxu1 %v1570_v0 }
 0x18f   :  { %1425 = vmatpush3.msra.mxu1 %v1735_v24 }
 0x190   :  { %1474 = vmatprep.subr.mxu1 %v1570_v0 }
 0x230   :  { %v300_v47 = vpop.f32.mrf.mxu1 }
 0x231   :  { %v304_v48 = vadd.f32 1.0, %v300_v47  ;;  %v307_v49 = vadd.f32 1e-08, %v300_v47 }
 0x232   :  { %v1348_v50 = vpop.f32.mrf.mxu1 }
 0x233   :  { %1520 = vrcp.f32 %v304_v48 }
 0x234   :  { %1522 = vrsqrt.f32 %v307_v49 }
 0x240   :  { %v1521_v51 = vpop.eup %1520 }
 0x241   :  { %v306_v52 = vmul.f32 %v1521_v51, %v300_v47  ;;  %v1523_v53 = vpop.eup %1522 }
 0x243   :  { %v309_v54 = vmul.f32 %v1523_v53, %v306_v52 }
 0x245   :  { %1352 = vmatmul.mubr.msk.f32.vlgmr.msra.gmra.mxu0 %vm123_vm0, %v309_v54 }
 0x246   :  { %1355 = vmatpush3.msra.mxu0 %v1627_v7 }
 0x247   :  { %1356 = vmatprep.subr.mxu0 %v1632_v8 }
 0x248   :  { %1357 = vmatpush3.msra.mxu0 %v1632_v8 }
 0x249   :  { %1358 = vmatprep.subr.mxu0 %v1639_v9 }
 0x24a   :  { %1359 = vmatpush3.msra.mxu0 %v1639_v9 }
 0x24b   :  { %1360 = vmatprep.subr.mxu0 %v1648_v10 }
 0x24c   :  { %1361 = vmatpush3.msra.mxu0 %v1648_v10 }
 0x24d   :  { %1362 = vmatprep.subr.mxu0 %v1655_v11 }
 0x24e   :  { %1363 = vmatpush3.msra.mxu0 %v1655_v11 }
 0x24f   :  { %1364 = vmatprep.subr.mxu0 %v1660_v12 }
 0x250   :  { %1365 = vmatpush3.msra.mxu0 %v1660_v12 }
 0x251   :  { %1366 = vmatprep.subr.mxu0 %v1674_v15 }
 0x252   :  { %1367 = vmatpush3.msra.mxu0 %v1674_v15 }
 0x253   :  { %1368 = vmatprep.subr.mxu0 %v1681_v16 }
 0x254   :  { %1369 = vmatpush3.msra.mxu0 %v1681_v16 }
 0x255   :  { %1370 = vmatprep.subr.mxu0 %v1688_v17 }
 0x256   :  { %1371 = vmatpush3.msra.mxu0 %v1688_v17 }
 0x257   :  { %1372 = vmatprep.subr.mxu0 %v1695_v18 }
 0x258   :  { %1373 = vmatpush3.msra.mxu0 %v1695_v18 }
 0x259   :  { %1374 = vmatprep.subr.mxu0 %v1702_v19 }
 0x25a   :  { %1375 = vmatpush3.msra.mxu0 %v1702_v19 }
 0x25b   :  { %1376 = vmatprep.subr.mxu0 %v1709_v20 }
 0x25c   :  { %1377 = vmatpush3.msra.mxu0 %v1709_v20 }
 0x25d   :  { %1378 = vmatprep.subr.mxu0 %v1716_v21 }
 0x25e   :  { %1379 = vmatpush3.msra.mxu0 %v1716_v21 }
 0x25f   :  { %1380 = vmatprep.subr.mxu0 %v1723_v22 }
 0x260   :  { %1381 = vmatpush3.msra.mxu0 %v1723_v22 }
 0x261   :  { %1382 = vmatprep.subr.mxu0 %v1729_v23 }
 0x262   :  { %1383 = vmatpush3.msra.mxu0 %v1729_v23 }
 0x263   :  { %1384 = vmatprep.subr.mxu0 %v1735_v24 }
 0x264   :  { %1385 = vmatpush3.msra.mxu0 %v1735_v24 }
 0x265   :  { %1389 = vmatprep.subr.msk.mxu0 %vm132_vm2, %v1617_v6 }
 0x305   :  { %v379_v61 = vpop.f32.mrf.mxu0 }
 0x306   :  { %v387_v62 = vmul.f32 %v1752_v45, %v379_v61 }
 0x307   :  { %v1353_v63 = vpop.f32.mrf.mxu0 }
 0x308   :  { %v395_v1 = vrot.slane %v387_v62, %v1823_v60 }
 0x30a   :  { %v396_v3 = vcombine.high %v395_v1, %v395_v1  ;;  %v403_v4 = vrot.slane %v395_v1, %v1823_v60 }
 0x30c   :  { %v410_v5 = vrot.slane %v396_v3, %v1823_v60  ;;  %v414_v13 = vrot.slane %v403_v4, %v1827_v2 }
 0x30e   :  { %v418_v14 = vrot.slane %v410_v5, %v1827_v2  ;;  %v421_v27 = vmul.f32 %v414_v13, %v1747_v26 }
 0x310   :  { %1386 = vmatprep.mubr.f32.mxu0 %v421_v27  ;;  %v422_v28 = vmul.f32 %v1745_v25, %v418_v14 }
 0x312   :  { %1387 = vmatmul.mubr.f32.vlgmr.msra.gmra.mxu0 %v422_v28 }
 0x313   :  { %1390 = vmatpush3.msk.msra.mxu0 %vm132_vm2, %v1617_v6 }
 0x314   :  { %1429 = vmatprep.subr.mxu0 %v1570_v0 }
 0x3d2   :  { %v1838_v29 = vpop.f32.mrf.mxu0 }
 0x3d3   :  { %v501_v30 = vsel %vm123_vm0, %v1838_v29, -inf }
 0x3d4   :  { %502 = vmax.xlane.f32.xlu1 %v501_v30  ;;  %v1842_v31 = vpop.f32.mrf.mxu0 }
 0x3d5   :  { %v498_v32 = vsel %vm123_vm0, %v1842_v31, -inf }
 0x3d6   :  { %499 = vmax.xlane.f32.xlu0 %v498_v32 }
 0x45d   :  { %v503_v33 = vpop.xlane.xlu1 %502 }
 0x45e   :  { %v505_v34 = vsub.f32 %v1838_v29, %v503_v33 }
 0x45f   :  { %v500_v35 = vpop.xlane.xlu0 %499 }
 0x460   :  { %v508_v36 = vmul.f32 1.442695, %v505_v34  ;;  %v504_v37 = vsub.f32 %v1842_v31, %v500_v35 }
 0x462   :  { %1524 = vpow2.f32 %v508_v36  ;;  %v506_v38 = vmul.f32 1.442695, %v504_v37 }
 0x464   :  { %1526 = vpow2.f32 %v506_v38 }
 0x46f   :  { %v1525_v39 = vpop.eup %1524 }
 0x470   :  { %v513_v40 = vsel %vm123_vm0, %v1525_v39, 0.0 }
 0x471   :  { %v1527_v41 = vpop.eup %1526  ;;  %514 = vadd.xlane.f32.xlu0 %v513_v40 }
 0x472   :  { %v510_v42 = vsel %vm123_vm0, %v1527_v41, 0.0 }
 0x473   :  { %511 = vadd.xlane.f32.xlu1 %v510_v42 }
 0x4fa   :  { %v515_v43 = vpop.xlane.xlu0 %514 }
 0x4fb   :  { %1528 = vrcp.f32 %v515_v43 }
 0x4fc   :  { %v512_v44 = vpop.xlane.xlu1 %511 }
 0x4fd   :  { %1530 = vrcp.f32 %v512_v44 }
 0x508   :  { %v1529_v45 = vpop.eup %1528 }
 0x509   :  { %v519_v48 = vmul.f32 %v1529_v45, %v1525_v39 }
 0x50a   :  { %v1531_v46 = vpop.eup %1530 }
 0x50b   :  { %v517_v47 = vmul.f32 %v1531_v46, %v1527_v41 }
 0x50d   :  { %1391 = vmatprep.mubr.msk.f32.mxu0 %vm123_vm0, %v517_v47 }
 0x50e   :  { %1392 = vmatmul.mubr.msk.f32.vlgmr.msra.gmra.mxu0 %vm123_vm0, %v519_v48 }
 0x50f   :  { %1430 = vmatpush3.msk.msra.mxu0 %vm132_vm2, %v1617_v6  ;;  %1431 = vmatprep.mubr.msk.f32.mxu0 %vm1571_vm3, %v1570_v0 }
 0x510   :  { %1434 = vmatprep.subr.mxu0 %v1627_v7 }
 0x5ce   :  { %v1393_v49 = vpop.f32.mrf.mxu0 }
 0x5cf   :  { %v602_v50 = vmul.f32 %v1393_v49, %v1745_v25 }
 0x5d0   :  { %v592_v51 = vpop.f32.mrf.mxu0 }
 0x5d1   :  { %v609_v52 = vrot.slane %v602_v50, 4  ;;  %v601_v53 = vmul.f32 %v592_v51, %v1747_v26 }
 0x5d3   :  { %v610_v54 = vadd.f32 %v609_v52, %v602_v50  ;;  %v603_v55 = vrot.slane %v601_v53, 4 }
 0x5d5   :  { %v611_v56 = vrot.slane %v610_v54, 2  ;;  %v604_v57 = vadd.f32 %v603_v55, %v601_v53 }
 0x5d7   :  { %v612_v58 = vadd.f32 %v611_v56, %v610_v54  ;;  %v605_v59 = vrot.slane %v604_v57, 2 }
 0x5d9   :  { %v613_v61 = vrot.slane %v612_v58, 1  ;;  %v606_v62 = vadd.f32 %v605_v59, %v604_v57 }
 0x5db   :  { %v614_v63 = vadd.f32 %v613_v61, %v612_v58  ;;  %v607_v1 = vrot.slane %v606_v62, 1 }
 0x5dd   :  { %v608_v3 = vadd.f32 %v607_v1, %v606_v62  ;;  %v616_v5 = vmul.f32 %v614_v63, %v614_v63 }
 0x5df   :  { %v615_v4 = vmul.f32 %v608_v3, %v608_v3  ;;  %v1860_v13 = vsel %vm231_vm4, %v614_v63, %v608_v3 }
 0x5e1   :  { %v619_v14 = vsel %vm231_vm4, %v616_v5, %v615_v4 }
 0x5e2   :  { %1427 = vmatmul.mubr.f32.vlgmr.msra.gmra.mxu1 %v619_v14 }
 0x5e3   :  { %1475 = vmatpush3.msra.mxu1 %v1627_v7  ;;  %1506 = vmatprep.mubr.msk.f32.mxu1 %vm1571_vm3, %v1570_v0 }
 0x5e4   :  { %1476 = vmatprep.subr.mxu1 %v1570_v0 }
 0x5e5   :  { %1477 = vmatpush3.msra.mxu1 %v1632_v8 }
 0x5e6   :  { %1478 = vmatprep.subr.mxu1 %v1570_v0 }
 0x5e7   :  { %1479 = vmatpush3.msra.mxu1 %v1639_v9 }
 0x5e8   :  { %1480 = vmatprep.subr.mxu1 %v1570_v0 }
 0x5e9   :  { %1481 = vmatpush3.msra.mxu1 %v1648_v10 }
 0x5ea   :  { %1482 = vmatprep.subr.mxu1 %v1570_v0 }
 0x5eb   :  { %1483 = vmatpush3.msra.mxu1 %v1655_v11 }
 0x5ec   :  { %1484 = vmatprep.subr.mxu1 %v1570_v0 }
 0x5ed   :  { %1485 = vmatpush3.msra.mxu1 %v1660_v12 }
 0x5ee   :  { %1486 = vmatprep.subr.mxu1 %v1570_v0 }
 0x5ef   :  { %1487 = vmatpush3.msra.mxu1 %v1674_v15 }
 0x5f0   :  { %1488 = vmatprep.subr.mxu1 %v1570_v0 }
 0x5f1   :  { %1489 = vmatpush3.msra.mxu1 %v1681_v16 }
 0x5f2   :  { %1490 = vmatprep.subr.mxu1 %v1570_v0 }
 0x5f3   :  { %1491 = vmatpush3.msra.mxu1 %v1688_v17 }
 0x5f4   :  { %1492 = vmatprep.subr.mxu1 %v1570_v0 }
 0x5f5   :  { %1493 = vmatpush3.msra.mxu1 %v1695_v18 }
 0x5f6   :  { %1494 = vmatprep.subr.mxu1 %v1570_v0 }
 0x5f7   :  { %1495 = vmatpush3.msra.mxu1 %v1702_v19 }
 0x5f8   :  { %1496 = vmatprep.subr.mxu1 %v1570_v0 }
 0x5f9   :  { %1497 = vmatpush3.msra.mxu1 %v1709_v20 }
 0x5fa   :  { %1498 = vmatprep.subr.mxu1 %v1570_v0 }
 0x5fb   :  { %1499 = vmatpush3.msra.mxu1 %v1716_v21 }
 0x5fc   :  { %1500 = vmatprep.subr.mxu1 %v1570_v0 }
 0x5fd   :  { %1501 = vmatpush3.msra.mxu1 %v1723_v22 }
 0x5fe   :  { %1502 = vmatprep.subr.mxu1 %v1570_v0 }
 0x5ff   :  { %1503 = vmatpush3.msra.mxu1 %v1729_v23 }
 0x600   :  { %1504 = vmatprep.subr.mxu1 %v1570_v0 }
 0x601   :  { %1505 = vmatpush3.msra.mxu1 %v1735_v24 }
 0x6a2   :  { %v687_v27 = vpop.f32.mrf.mxu1 }
 0x6a3   :  { %v691_v28 = vadd.f32 1.0, %v687_v27  ;;  %v694_v30 = vadd.f32 1e-08, %v687_v27 }
 0x6a4   :  { %v1428_v32 = vpop.f32.mrf.mxu1 }
 0x6a5   :  { %1532 = vrcp.f32 %v691_v28 }
 0x6a6   :  { %1534 = vrsqrt.f32 %v694_v30 }
 0x6b2   :  { %v1533_v33 = vpop.eup %1532 }
 0x6b3   :  { %v693_v34 = vmul.f32 %v1533_v33, %v687_v27  ;;  %v1535_v35 = vpop.eup %1534 }
 0x6b5   :  { %v696_v36 = vmul.f32 %v1535_v35, %v693_v34 }
 0x6b7   :  { %1432 = vmatmul.mubr.msk.f32.vlgmr.msra.gmra.mxu0 %vm123_vm0, %v696_v36 }
 0x6b8   :  { %1435 = vmatpush3.msra.mxu0 %v1627_v7 }
 0x6b9   :  { %1436 = vmatprep.subr.mxu0 %v1632_v8 }
 0x6ba   :  { %1437 = vmatpush3.msra.mxu0 %v1632_v8 }
 0x6bb   :  { %1438 = vmatprep.subr.mxu0 %v1639_v9 }
 0x6bc   :  { %1439 = vmatpush3.msra.mxu0 %v1639_v9 }
 0x6bd   :  { %1440 = vmatprep.subr.mxu0 %v1648_v10 }
 0x6be   :  { %1441 = vmatpush3.msra.mxu0 %v1648_v10 }
 0x6bf   :  { %1442 = vmatprep.subr.mxu0 %v1655_v11 }
 0x6c0   :  { %1443 = vmatpush3.msra.mxu0 %v1655_v11 }
 0x6c1   :  { %1444 = vmatprep.subr.mxu0 %v1660_v12 }
 0x6c2   :  { %1445 = vmatpush3.msra.mxu0 %v1660_v12 }
 0x6c3   :  { %1446 = vmatprep.subr.mxu0 %v1674_v15 }
 0x6c4   :  { %1447 = vmatpush3.msra.mxu0 %v1674_v15 }
 0x6c5   :  { %1448 = vmatprep.subr.mxu0 %v1681_v16 }
 0x6c6   :  { %1449 = vmatpush3.msra.mxu0 %v1681_v16 }
 0x6c7   :  { %1450 = vmatprep.subr.mxu0 %v1688_v17 }
 0x6c8   :  { %1451 = vmatpush3.msra.mxu0 %v1688_v17 }
 0x6c9   :  { %1452 = vmatprep.subr.mxu0 %v1695_v18 }
 0x6ca   :  { %1453 = vmatpush3.msra.mxu0 %v1695_v18 }
 0x6cb   :  { %1454 = vmatprep.subr.mxu0 %v1702_v19 }
 0x6cc   :  { %1455 = vmatpush3.msra.mxu0 %v1702_v19 }
 0x6cd   :  { %1456 = vmatprep.subr.mxu0 %v1709_v20 }
 0x6ce   :  { %1457 = vmatpush3.msra.mxu0 %v1709_v20 }
 0x6cf   :  { %1458 = vmatprep.subr.mxu0 %v1716_v21 }
 0x6d0   :  { %1459 = vmatpush3.msra.mxu0 %v1716_v21 }
 0x6d1   :  { %1460 = vmatprep.subr.mxu0 %v1723_v22 }
 0x6d2   :  { %1461 = vmatpush3.msra.mxu0 %v1723_v22 }
 0x6d3   :  { %1462 = vmatprep.subr.mxu0 %v1729_v23 }
 0x6d4   :  { %1463 = vmatpush3.msra.mxu0 %v1729_v23 }
 0x6d5   :  { %1464 = vmatprep.subr.mxu0 %v1735_v24 }
 0x6d6   :  { %1465 = vmatpush3.msra.mxu0 %v1735_v24 }
 0x6d7   :  { %1469 = vmatprep.subr.msk.mxu0 %vm132_vm2, %v1617_v6 }
 0x777   :  { %v766_v7 = vpop.f32.mrf.mxu0 }
 0x778   :  { %v774_v8 = vmul.f32 %v1860_v13, %v766_v7 }
 0x779   :  { %v1433_v9 = vpop.f32.mrf.mxu0 }
 0x77a   :  { %v782_v10 = vrot.slane %v774_v8, %v1823_v60 }
 0x77c   :  { %v783_v11 = vcombine.high %v782_v10, %v782_v10  ;;  %v790_v12 = vrot.slane %v782_v10, %v1823_v60 }
 0x77e   :  { %v797_v15 = vrot.slane %v783_v11, %v1823_v60  ;;  %v801_v16 = vrot.slane %v790_v12, %v1827_v2 }
 0x780   :  { %v805_v17 = vrot.slane %v797_v15, %v1827_v2  ;;  %v808_v18 = vmul.f32 %v801_v16, %v1747_v26 }
 0x782   :  { %1466 = vmatprep.mubr.f32.mxu0 %v808_v18  ;;  %v809_v19 = vmul.f32 %v1745_v25, %v805_v17 }
 0x784   :  { %1467 = vmatmul.mubr.f32.vlgmr.msra.gmra.mxu0 %v809_v19 }
 0x785   :  { %1470 = vmatpush3.msk.msra.mxu0 %vm132_vm2, %v1617_v6 }
 0x786   :  { %1509 = vmatprep.subr.mxu0 %v1570_v0 }
 0x844   :  { %v1468_v20 = vpop.f32.mrf.mxu0 }
 0x845   :  { %v886_v21 = vadd.f32 %v1468_v20, %v1838_v29 }
 0x846   :  { %v876_v22 = vpop.f32.mrf.mxu0 }
 0x847   :  { %v885_v23 = vadd.f32 %v876_v22, %v1842_v31  ;;  %v890_v24 = vsel %vm123_vm0, %v886_v21, -inf }
 0x848   :  { %891 = vmax.xlane.f32.xlu0 %v890_v24 }
 0x849   :  { %v887_v60 = vsel %vm123_vm0, %v885_v23, -inf }
 0x84a   :  { %888 = vmax.xlane.f32.xlu1 %v887_v60 }
 0x8d1   :  { %v892_v2 = vpop.xlane.xlu0 %891 }
 0x8d2   :  { %v894_v37 = vsub.f32 %v886_v21, %v892_v2 }
 0x8d3   :  { %v889_v38 = vpop.xlane.xlu1 %888 }
 0x8d4   :  { %v897_v39 = vmul.f32 1.442695, %v894_v37  ;;  %v893_v40 = vsub.f32 %v885_v23, %v889_v38 }
 0x8d6   :  { %1536 = vpow2.f32 %v897_v39  ;;  %v895_v41 = vmul.f32 1.442695, %v893_v40 }
 0x8d8   :  { %1538 = vpow2.f32 %v895_v41 }
 0x8e3   :  { %v1537_v42 = vpop.eup %1536 }
 0x8e4   :  { %v902_v29 = vsel %vm123_vm0, %v1537_v42, 0.0 }
 0x8e5   :  { %v1539_v43 = vpop.eup %1538  ;;  %903 = vadd.xlane.f32.xlu0 %v902_v29 }
 0x8e6   :  { %v899_v31 = vsel %vm123_vm0, %v1539_v43, 0.0 }
 0x8e7   :  { %900 = vadd.xlane.f32.xlu1 %v899_v31 }
 0x96e   :  { %v904_v44 = vpop.xlane.xlu0 %903 }
 0x96f   :  { %1540 = vrcp.f32 %v904_v44 }
 0x970   :  { %v901_v45 = vpop.xlane.xlu1 %900 }
 0x971   :  { %1542 = vrcp.f32 %v901_v45 }
 0x97c   :  { %v1541_v46 = vpop.eup %1540 }
 0x97d   :  { %v908_v49 = vmul.f32 %v1541_v46, %v1537_v42 }
 0x97e   :  { %v1543_v47 = vpop.eup %1542 }
 0x97f   :  { %v906_v48 = vmul.f32 %v1543_v47, %v1539_v43 }
 0x981   :  { %1471 = vmatprep.mubr.msk.f32.mxu0 %vm123_vm0, %v906_v48 }
 0x982   :  { %1472 = vmatmul.mubr.msk.f32.vlgmr.msra.gmra.mxu0 %vm123_vm0, %v908_v49 }
 0x983   :  { %1510 = vmatpush3.msk.msra.mxu0 %vm132_vm2, %v1617_v6  ;;  %1511 = vmatprep.mubr.msk.f32.mxu0 %vm1571_vm3, %v1570_v0 }
 0xa42   :  { %v1473_v50 = vpop.f32.mrf.mxu0 }
 0xa43   :  { %v991_v51 = vmul.f32 %v1473_v50, %v1745_v25 }
 0xa44   :  { %v981_v52 = vpop.f32.mrf.mxu0 }
 0xa45   :  { %v998_v53 = vrot.slane %v991_v51, 4  ;;  %v990_v54 = vmul.f32 %v981_v52, %v1747_v26 }
 0xa47   :  { %v999_v55 = vadd.f32 %v998_v53, %v991_v51  ;;  %v992_v56 = vrot.slane %v990_v54, 4 }
 0xa49   :  { %v1000_v57 = vrot.slane %v999_v55, 2  ;;  %v993_v58 = vadd.f32 %v992_v56, %v990_v54 }
 0xa4b   :  { %v1001_v59 = vadd.f32 %v1000_v57, %v999_v55  ;;  %v994_v61 = vrot.slane %v993_v58, 2 }
 0xa4d   :  { %v1002_v62 = vrot.slane %v1001_v59, 1  ;;  %v995_v63 = vadd.f32 %v994_v61, %v993_v58 }
 0xa4f   :  { %v1003_v1 = vadd.f32 %v1002_v62, %v1001_v59  ;;  %v996_v6 = vrot.slane %v995_v63, 1 }
 0xa51   :  { %v997_v3 = vadd.f32 %v996_v6, %v995_v63  ;;  %v1005_v0 = vmul.f32 %v1003_v1, %v1003_v1 }
 0xa53   :  { %v1004_v4 = vmul.f32 %v997_v3, %v997_v3  ;;  %v1161_v5 = vsel %vm231_vm4, %v1003_v1, %v997_v3 }
 0xa55   :  { %v1008_v25 = vsel %vm231_vm4, %v1005_v0, %v1004_v4 }
 0xa56   :  { %1507 = vmatmul.mubr.f32.vlgmr.msra.gmra.mxu1 %v1008_v25 }
 0xb16   :  { %v1076_v13 = vpop.f32.mrf.mxu1 }
 0xb17   :  { %v1080_v26 = vadd.f32 1.0, %v1076_v13  ;;  %v1083_v14 = vadd.f32 1e-08, %v1076_v13 }
 0xb18   :  { %v1508_v27 = vpop.f32.mrf.mxu1 }
 0xb19   :  { %1544 = vrcp.f32 %v1080_v26 }
 0xb1a   :  { %1546 = vrsqrt.f32 %v1083_v14 }
 0xb26   :  { %v1545_v28 = vpop.eup %1544 }
 0xb27   :  { %v1082_v30 = vmul.f32 %v1545_v28, %v1076_v13  ;;  %v1547_v32 = vpop.eup %1546 }
 0xb29   :  { %v1085_v33 = vmul.f32 %v1547_v32, %v1082_v30 }
 0xb2b   :  { %1512 = vmatmul.mubr.msk.f32.vlgmr.msra.gmra.mxu0 %vm123_vm0, %v1085_v33 }
 0xbeb   :  { %v1155_v34 = vpop.f32.mrf.mxu0 }
 0xbec   :  { %v1163_v35 = vmul.f32 %v1161_v5, %v1155_v34 }
 0xbed   :  { %v1513_v36 = vpop.f32.mrf.mxu0 }
 0xbee   :  { %1164 = vst [vmem:[#allocation3] sm:$0x3] %v1163_v35 }
 0xbef   :  { %1559 = shalt.err (!%p1556_p4)
}
 0xbf0   :  { %1174 = dma.vmem_to_hbm [thread:$0]  %s1172_s3, 32, %s1965_s4, [#allocation4]  }
 0xbf1   :  { %1568 = dma.done.wait [#allocation4], 32  }
 0xbf2   :  { %1569 = vsyncadd [#allocation4], 4294967264 }
 0xbf3   :  { %1178 = vsyncpa [#allocation4], 1 }

</bundles_post_ra>
